<compile_context>
chip_gen: v7x
topology: tpu7x:2x2x1
jax: 0.10.0
libtpu: 0.0.40
codegen_flags: <defaults>
</compile_context>

<pallas_src>
import functools

import jax
import jax.numpy as jnp
from jax.experimental import pallas as pl
from jax.experimental.pallas import tpu as pltpu


def _vq_kernel(z_ref, e_ref, et_ref, zq_ref, idx_ref, sqerr_ref, *,
               hw, tile_hw, need_mask):
    """One (batch, spatial-tile) grid step.

    z_ref:     (1, e_dim, tile_hw)  input slab (spatial positions on lanes)
    e_ref:     (n_e, e_dim)         codebook (resident block)
    et_ref:    (e_dim, n_e)         transposed codebook (resident block)
    zq_ref:    (1, e_dim, tile_hw)  quantized output slab (NCHW orientation)
    idx_ref:   (1, 1, tile_hw)      argmin code indices (lane-dense)
    sqerr_ref: (1, 1, 1, 128)       per-tile partial sum of min distances
    """
    z = z_ref[0].astype(jnp.float32)           # (e_dim, T)
    e = e_ref[...].astype(jnp.float32)         # (n_e, e_dim)
    et = et_ref[...].astype(jnp.float32)       # (e_dim, n_e)

    # d[c, p] = ||e_c||^2 + ||z_p||^2 - 2 <e_c, z_p>   -> (n_e, T), spatial on lanes
    z_sq = jnp.sum(z * z, axis=0, keepdims=True)               # (1, T)
    e_sq = jnp.sum(e * e, axis=1, keepdims=True)               # (n_e, 1)
    ez = jnp.dot(e, z, preferred_element_type=jnp.float32)     # (n_e, T)  MXU
    d = e_sq + z_sq - 2.0 * ez

    # argmin over codes (first occurrence on ties, like torch.argmin).
    n_codes = d.shape[0]
    min_d = jnp.min(d, axis=0, keepdims=True)                  # (1, T)
    row = jax.lax.broadcasted_iota(jnp.int32, d.shape, 0)      # (n_e, T)
    idx = jnp.min(jnp.where(d == min_d, row, n_codes),
                  axis=0, keepdims=True)                       # (1, T)

    # One-hot lives only in VMEM; quantize via MXU with the pre-transposed
    # codebook (no per-step e.T / vxpose).
    # TODO(synk): for large codebooks (n_e >~ 1024) replace the one-hot matmul
    # with a row gather from et_ref to avoid the (n_e, T) intermediate.
    enc = (row == idx).astype(jnp.float32)                        # (n_e, T)
    z_q = jnp.dot(et, enc, preferred_element_type=jnp.float32)    # (e_dim, T)

    zq_ref[...] = z_q[None].astype(zq_ref.dtype)
    idx_ref[...] = idx[None].astype(jnp.int32)

    # Squared-error partial straight from the distances:
    # ||z_q - z||^2 == d[idx] == min_d; clamp at 0 against f32 cancellation.
    sq_lanes = jnp.maximum(min_d, 0.0)                            # (1, T)
    if need_mask:
        lane = jax.lax.broadcasted_iota(jnp.int32, (1, tile_hw), 1)
        valid = (pl.program_id(1) * tile_hw + lane) < hw
        sq_lanes = jnp.where(valid, sq_lanes, 0.0)
    sq = jnp.sum(sq_lanes)
    # TODO(synk): could shrink this to a (1,1) SMEM scalar output once the
    # vector->scalar reduce-store path is guaranteed on all target jax versions.
    sqerr_ref[0, 0] = jnp.full((1, 128), sq, dtype=jnp.float32)


def _vmem_step_bytes(t, e_dim, n_e):
    """Rough per-grid-step VMEM footprint for tile width t (lanes)."""
    f32 = 4
    io = 2 * (2 * e_dim * t) * f32              # double-buffered z in + z_q out
    idx = 2 * 8 * t * f32                       # double-buffered idx out (sublane pad)
    tmp = (5 * n_e * t + 4 * e_dim * t) * f32   # d / ez / row / enc / reductions
    fixed = 4 * n_e * e_dim * f32 + (256 << 10)
    return io + idx + tmp + fixed


def _choose_tile_hw(hw, bt, e_dim, n_e, budget_bytes, max_tile_hw=None):
    """Pick a lane-dense spatial tile; prefer divisors of hw (no pad/slice)."""
    cap = hw if max_tile_hw is None else min(hw, max_tile_hw)
    cap = max(cap, 128)
    if hw % 128 == 0:
        cands = [t for t in range(128, min(cap, hw) + 1, 128) if hw % t == 0]
    else:
        hi = ((min(cap, hw) + 127) // 128) * 128
        cands = list(range(128, hi + 1, 128))
    fits = [t for t in cands if _vmem_step_bytes(t, e_dim, n_e) <= budget_bytes]
    if not fits:
        fits = [cands[0]]
    # v7x: keep >= 2 grid steps when possible so both TensorCores get work.
    multi = [t for t in fits if bt * ((hw + t - 1) // t) >= 2]
    t = max(multi) if multi else max(fits)
    n_tiles = (hw + t - 1) // t
    return t, n_tiles, n_tiles * t


def vector_quantizer_forward(z_nchw, embedding, beta, *, max_tile_hw=None):
    """Reproduces VectorQuantizer.forward (forward values).

    Args:
      z_nchw:    (bt, ch, h, w) float32, ch == e_dim.
      embedding: (n_e, e_dim) float32 codebook.
      beta:      commitment-loss weight.

    Returns (loss, z_q_nchw, perplexity, min_encodings, min_encoding_indices).
    """
    bt, ch, h, w = z_nchw.shape
    n_e, e_dim = embedding.shape
    assert ch == e_dim
    hw = h * w

    # Generation-aware VMEM limit: ~70% of physical, capped at 64 MiB
    # (v7x: ~45 MiB of its 64 MiB; v5e/v6e: 64 MiB of 128 MiB).
    try:
        vmem_cap = int(pltpu.get_tpu_info().vmem_capacity_bytes)
    except Exception:  # conservative fallback if query unavailable
        vmem_cap = 64 * 1024 * 1024
    vmem_limit = min(int(0.70 * vmem_cap), 64 * 1024 * 1024)
    tile_budget = int(0.60 * vmem_limit)

    tile_hw, n_tiles, hw_pad = _choose_tile_hw(
        hw, bt, e_dim, n_e, tile_budget, max_tile_hw)

    # NCHW-native view: (bt, e_dim, h*w).  No transpose; pad only if hw is not
    # a multiple of 128 (never for typical VQ-VAE feature maps).
    z3 = z_nchw.reshape(bt, e_dim, hw).astype(jnp.float32)
    need_mask = hw_pad != hw
    if need_mask:
        z3 = jnp.pad(z3, ((0, 0), (0, 0), (0, hw_pad - hw)))

    emb_f32 = embedding.astype(jnp.float32)
    emb_t = emb_f32.T  # tiny one-time transpose in the wrapper, not per step

    kernel = functools.partial(_vq_kernel, hw=hw, tile_hw=tile_hw,
                               need_mask=need_mask)

    z_q3, idx3, sq_part = pl.pallas_call(
        kernel,
        out_shape=(
            jax.ShapeDtypeStruct((bt, e_dim, hw_pad), jnp.float32),    # z_q
            jax.ShapeDtypeStruct((bt, 1, hw_pad), jnp.int32),          # indices
            jax.ShapeDtypeStruct((bt, n_tiles, 1, 128), jnp.float32),  # sq part
        ),
        grid_spec=pltpu.PrefetchScalarGridSpec(
            num_scalar_prefetch=0,
            grid=(bt, n_tiles),
            in_specs=[
                pl.BlockSpec((1, e_dim, tile_hw), lambda b, j: (b, 0, j)),
                pl.BlockSpec((n_e, e_dim), lambda b, j: (0, 0)),
                pl.BlockSpec((e_dim, n_e), lambda b, j: (0, 0)),
            ],
            out_specs=[
                pl.BlockSpec((1, e_dim, tile_hw), lambda b, j: (b, 0, j)),
                pl.BlockSpec((1, 1, tile_hw), lambda b, j: (b, 0, j)),
                pl.BlockSpec((1, 1, 1, 128), lambda b, j: (b, j, 0, 0)),
            ],
        ),
        compiler_params=pltpu.CompilerParams(
            dimension_semantics=("parallel", "parallel"),
            vmem_limit_bytes=vmem_limit),
    )(z3, emb_f32, emb_t)

    M = bt * hw
    # loss = mean((sg(z_q)-z)^2) + beta*mean((z_q-sg(z))^2); forward values equal.
    # TODO(synk): forward values only — a custom_vjp would be needed to
    # reproduce the straight-through estimator / detach() gradient semantics.
    mse = jnp.sum(sq_part[:, :, 0, 0]) / jnp.float32(M * e_dim)
    loss = (1.0 + beta) * mse

    # Outputs are already NCHW; slice only on the (rare) padded fallback path.
    if need_mask:
        z_q_nchw = z_q3[:, :, :hw].reshape(bt, e_dim, h, w)
        min_encoding_indices = idx3[:, 0, :hw].reshape(bt, h, w)
    else:
        z_q_nchw = z_q3.reshape(bt, e_dim, h, w)
        min_encoding_indices = idx3.reshape(bt, h, w)

    # Perplexity from an index histogram (no (M, n_e) one-hot needed for it).
    flat_idx = min_encoding_indices.reshape(-1)
    counts = jnp.zeros((n_e,), jnp.float32).at[flat_idx].add(1.0)
    e_mean = counts / jnp.float32(M)
    perplexity = jnp.exp(-jnp.sum(e_mean * jnp.log(e_mean + 1e-10)))

    # min_encodings materialized only because the module interface returns it.
    min_encodings = jax.nn.one_hot(flat_idx, n_e, dtype=jnp.float32)

    return loss, z_q_nchw, perplexity, min_encodings, min_encoding_indices


def _reference_forward(z_nchw, embedding, beta):
    """Pure-JAX reference (mirrors the torch code)."""
    bt, ch, h, w = z_nchw.shape
    z = jnp.transpose(z_nchw, (0, 2, 3, 1))
    zf = z.reshape(-1, ch)
    d = (jnp.sum(zf**2, axis=1, keepdims=True) + jnp.sum(embedding**2, axis=1)
         - 2.0 * zf @ embedding.T)
    idx = jnp.argmin(d, axis=1)
    enc = jax.nn.one_hot(idx, embedding.shape[0], dtype=jnp.float32)
    z_q = (enc @ embedding).reshape(z.shape)
    loss = jnp.mean((z_q - z) ** 2) + beta * jnp.mean((z_q - z) ** 2)
    e_mean = jnp.mean(enc, axis=0)
    perp = jnp.exp(-jnp.sum(e_mean * jnp.log(e_mean + 1e-10)))
    return loss, jnp.transpose(z_q, (0, 3, 1, 2)), perp, enc, idx.reshape(bt, h, w)


if __name__ == "__main__":
    # Module config (synthetic, deterministic init — no checkpoint loading).
    n_e, e_dim, beta = 32, 8, 0.25
    bt, h, w = 2, 16, 16

    key = jax.random.PRNGKey(0)
    k_emb, k_z = jax.random.split(key)
    # nn.Embedding weight ~ U(-1/n_e, 1/n_e)
    embedding = jax.random.uniform(
        k_emb, (n_e, e_dim), jnp.float32, minval=-1.0 / n_e, maxval=1.0 / n_e)
    z = jax.random.normal(k_z, (bt, e_dim, h, w), jnp.float32)  # NCHW input

    fwd = jax.jit(functools.partial(vector_quantizer_forward, beta=beta))
    loss, z_q, perplexity, min_encodings, min_idx = fwd(z, embedding)
    jax.block_until_ready((loss, z_q, perplexity, min_encodings, min_idx))

    # sanity check against pure-JAX reference
    r_loss, r_zq, r_perp, r_enc, r_idx = _reference_forward(z, embedding, beta)
    assert jnp.allclose(loss, r_loss, atol=1e-4), (loss, r_loss)
    assert jnp.allclose(z_q, r_zq, atol=1e-5)
    assert jnp.allclose(perplexity, r_perp, atol=1e-4)
    assert jnp.allclose(min_encodings, r_enc)
    assert jnp.array_equal(min_idx, r_idx)

    print("KERNEL_OK")
</pallas_src>

<mosaic_0001>
module attributes {stable_mosaic.version = 11 : i64} {
  func.func private @main(%arg0: i32) attributes {dimension_semantics = [#tpu.dimension_semantics<core_parallel>], iteration_bounds = array<i64: 2>, tpu.core_type = #tpu.core_type<sc_scalar_subcore>, window_params = []} {
    return
  }
}

module attributes {stable_mosaic.version = 11 : i64} {
  func.func private @main(%arg0: i32) attributes {dimension_semantics = [#tpu.dimension_semantics<core_parallel>], iteration_bounds = array<i64: 2>, tpu.core_type = #tpu.core_type<sc_scalar_subcore>, window_params = []} {
    return
  }
}

module attributes {stable_mosaic.version = 11 : i64} {
  func.func @_vq_kernel(%arg0: i32, %arg1: i32, %arg2: memref<1x8x256xf32, #tpu.memory_space<vmem>>, %arg3: memref<32x8xf32, #tpu.memory_space<vmem>>, %arg4: memref<8x32xf32, #tpu.memory_space<vmem>>, %arg5: memref<1x8x256xf32, #tpu.memory_space<vmem>>, %arg6: memref<1x1x256xi32, #tpu.memory_space<vmem>>, %arg7: memref<1x1x1x128xf32, #tpu.memory_space<vmem>>) attributes {dimension_semantics = [#tpu.dimension_semantics<parallel>, #tpu.dimension_semantics<parallel>], iteration_bounds = array<i64: 2, 1>, scalar_prefetch = 0 : i64, scratch_operands = 0 : i64, tpu.core_type = #tpu.core_type<tc>, window_params = [{transform_indices = @transform_0, window_bounds = array<i64: 1, 8, 256>}, {pipeline_mode = #tpu.pipeline_mode<synchronous>, transform_indices = @transform_1, window_bounds = array<i64: 32, 8>}, {pipeline_mode = #tpu.pipeline_mode<synchronous>, transform_indices = @transform_2, window_bounds = array<i64: 8, 32>}, {transform_indices = @transform_3, window_bounds = array<i64: 1, 8, 256>}, {transform_indices = @transform_4, window_bounds = array<i64: 1, 1, 256>}, {transform_indices = @transform_5, window_bounds = array<i64: 1, 1, 1, 128>}]} {
    %c0 = arith.constant 0 : index
    %c0_0 = arith.constant 0 : index
    %c0_1 = arith.constant 0 : index
    %0 = vector.load %arg2[%c0, %c0_0, %c0_1] : memref<1x8x256xf32, #tpu.memory_space<vmem>>, vector<1x8x256xf32>
    %1 = vector.shape_cast %0 : vector<1x8x256xf32> to vector<8x256xf32>
    %c0_2 = arith.constant 0 : index
    %c0_3 = arith.constant 0 : index
    %2 = vector.load %arg3[%c0_2, %c0_3] : memref<32x8xf32, #tpu.memory_space<vmem>>, vector<32x8xf32>
    %c0_4 = arith.constant 0 : index
    %c0_5 = arith.constant 0 : index
    %3 = vector.load %arg4[%c0_4, %c0_5] : memref<8x32xf32, #tpu.memory_space<vmem>>, vector<8x32xf32>
    %4 = arith.mulf %1, %1 : vector<8x256xf32>
    %cst = arith.constant dense<0.000000e+00> : vector<256xf32>
    %5 = vector.multi_reduction <add>, %4, %cst [0] : vector<8x256xf32> to vector<256xf32>
    %6 = vector.shape_cast %5 : vector<256xf32> to vector<1x256xf32>
    %7 = arith.mulf %2, %2 : vector<32x8xf32>
    %cst_6 = arith.constant dense<0.000000e+00> : vector<32xf32>
    %8 = vector.multi_reduction <add>, %7, %cst_6 [1] : vector<32x8xf32> to vector<32xf32>
    %9 = vector.shape_cast %8 : vector<32xf32> to vector<32x1xf32>
    %cst_7 = arith.constant dense<0.000000e+00> : vector<32x256xf32>
    %10 = tpu.matmul %2, %1, %cst_7 {dimension_numbers = #tpu.dot_dimension_numbers<[1], [0], [0], [1], [0, 0, 1, 1], [], []>} : vector<32x8xf32>, vector<8x256xf32>, vector<32x256xf32> -> vector<32x256xf32>
    %11 = vector.broadcast %9 : vector<32x1xf32> to vector<32x256xf32>
    %12 = vector.broadcast %6 : vector<1x256xf32> to vector<32x256xf32>
    %13 = arith.addf %11, %12 : vector<32x256xf32>
    %cst_8 = arith.constant 2.000000e+00 : f32
    %14 = vector.broadcast %cst_8 : f32 to vector<32x256xf32>
    %15 = arith.mulf %14, %10 : vector<32x256xf32>
    %16 = arith.subf %13, %15 : vector<32x256xf32>
    %cst_9 = arith.constant dense<0x7F800000> : vector<256xf32>
    %17 = vector.multi_reduction <minimumf>, %16, %cst_9 [0] : vector<32x256xf32> to vector<256xf32>
    %18 = vector.shape_cast %17 : vector<256xf32> to vector<1x256xf32>
    %19 = tpu.iota {dimensions = array<i32: 0>} : vector<32x256xi32>
    %20 = vector.broadcast %18 : vector<1x256xf32> to vector<32x256xf32>
    %21 = arith.cmpf oeq, %16, %20 : vector<32x256xf32>
    %c32_i32 = arith.constant 32 : i32
    %22 = vector.broadcast %c32_i32 : i32 to vector<32x256xi32>
    %23 = arith.select %21, %19, %22 : vector<32x256xi1>, vector<32x256xi32>
    %cst_10 = arith.constant dense<2147483647> : vector<256xi32>
    %24 = vector.multi_reduction <minsi>, %23, %cst_10 [0] : vector<32x256xi32> to vector<256xi32>
    %25 = vector.shape_cast %24 : vector<256xi32> to vector<1x256xi32>
    %26 = vector.broadcast %25 : vector<1x256xi32> to vector<32x256xi32>
    %27 = arith.cmpi eq, %19, %26 : vector<32x256xi32>
    %28 = arith.extui %27 : vector<32x256xi1> to vector<32x256xi32>
    %29 = arith.sitofp %28 : vector<32x256xi32> to vector<32x256xf32>
    %cst_11 = arith.constant dense<0.000000e+00> : vector<8x256xf32>
    %30 = tpu.matmul %3, %29, %cst_11 {dimension_numbers = #tpu.dot_dimension_numbers<[1], [0], [0], [1], [0, 0, 1, 1], [], []>} : vector<8x32xf32>, vector<32x256xf32>, vector<8x256xf32> -> vector<8x256xf32>
    %31 = vector.shape_cast %30 : vector<8x256xf32> to vector<1x8x256xf32>
    %c0_12 = arith.constant 0 : index
    %c0_13 = arith.constant 0 : index
    %c0_14 = arith.constant 0 : index
    %32 = vector.load %arg5[%c0_12, %c0_13, %c0_14] : memref<1x8x256xf32, #tpu.memory_space<vmem>>, vector<1x8x256xf32>
    tpu.vector_store %arg5[%c0_12, %c0_13, %c0_14], %31 {strides = array<i32>} : memref<1x8x256xf32, #tpu.memory_space<vmem>>, vector<1x8x256xf32>,
    %33 = vector.shape_cast %25 : vector<1x256xi32> to vector<1x1x256xi32>
    %c0_15 = arith.constant 0 : index
    %c0_16 = arith.constant 0 : index
    %c0_17 = arith.constant 0 : index
    %34 = vector.load %arg6[%c0_15, %c0_16, %c0_17] : memref<1x1x256xi32, #tpu.memory_space<vmem>>, vector<1x1x256xi32>
    tpu.vector_store %arg6[%c0_15, %c0_16, %c0_17], %33 {strides = array<i32>} : memref<1x1x256xi32, #tpu.memory_space<vmem>>, vector<1x1x256xi32>,
    %cst_18 = arith.constant 0.000000e+00 : f32
    %35 = vector.broadcast %cst_18 : f32 to vector<1x256xf32>
    %36 = arith.maximumf %18, %35 : vector<1x256xf32>
    %37 = vector.shape_cast %36 : vector<1x256xf32> to vector<1x1x256xf32>
    %cst_19 = arith.constant dense<0.000000e+00> : vector<1xf32>
    %38 = vector.multi_reduction <add>, %37, %cst_19 [1, 2] : vector<1x1x256xf32> to vector<1xf32>
    %39 = vector.shape_cast %38 : vector<1xf32> to vector<1x1x1xf32>
    %40 = vector.extract %39[0, 0, 0] : f32 from vector<1x1x1xf32>
    %41 = vector.broadcast %40 : f32 to vector<1x128xf32>
    %c0_20 = arith.constant 0 : index
    %c0_21 = arith.constant 0 : index
    %c0_22 = arith.constant 0 : index
    %c0_23 = arith.constant 0 : index
    %42 = vector.load %arg7[%c0_20, %c0_21, %c0_22, %c0_23] : memref<1x1x1x128xf32, #tpu.memory_space<vmem>>, vector<1x1x1x128xf32>
    %43 = vector.shape_cast %42 : vector<1x1x1x128xf32> to vector<1x128xf32>
    %44 = vector.shape_cast %41 : vector<1x128xf32> to vector<1x1x1x128xf32>
    tpu.vector_store %arg7[%c0_20, %c0_21, %c0_22, %c0_23], %44 {strides = array<i32>} : memref<1x1x1x128xf32, #tpu.memory_space<vmem>>, vector<1x1x1x128xf32>,
    return
  }
  func.func @transform_0(%arg0: i32, %arg1: i32) -> (i32, i32, i32) {
    %c0_i32 = arith.constant 0 : i32
    %c0_i32_0 = arith.constant 0 : i32
    return %arg0, %c0_i32, %arg1 : i32, i32, i32
  }
  func.func @transform_1(%arg0: i32, %arg1: i32) -> (i32, i32) {
    %c0_i32 = arith.constant 0 : i32
    %c0_i32_0 = arith.constant 0 : i32
    %c0_i32_1 = arith.constant 0 : i32
    return %c0_i32, %c0_i32_0 : i32, i32
  }
  func.func @transform_2(%arg0: i32, %arg1: i32) -> (i32, i32) {
    %c0_i32 = arith.constant 0 : i32
    %c0_i32_0 = arith.constant 0 : i32
    %c0_i32_1 = arith.constant 0 : i32
    return %c0_i32, %c0_i32_0 : i32, i32
  }
  func.func @transform_3(%arg0: i32, %arg1: i32) -> (i32, i32, i32) {
    %c0_i32 = arith.constant 0 : i32
    %c0_i32_0 = arith.constant 0 : i32
    return %arg0, %c0_i32, %arg1 : i32, i32, i32
  }
  func.func @transform_4(%arg0: i32, %arg1: i32) -> (i32, i32, i32) {
    %c0_i32 = arith.constant 0 : i32
    %c0_i32_0 = arith.constant 0 : i32
    return %arg0, %c0_i32, %arg1 : i32, i32, i32
  }
  func.func @transform_5(%arg0: i32, %arg1: i32) -> (i32, i32, i32, i32) {
    %c0_i32 = arith.constant 0 : i32
    %c0_i32_0 = arith.constant 0 : i32
    %c0_i32_1 = arith.constant 0 : i32
    return %arg0, %arg1, %c0_i32, %c0_i32_0 : i32, i32, i32, i32
  }
}

</mosaic_0001>

<bundles_post_ra>
// kernel: vector_quantizer_forward.1
= control target key start
LH: loop header
LB: loop body
LE: loop exit
PB: predicated region body
PF: predicated region fallthrough
CT: control target
= control target key end

     0   :  { %s967_s18 = smov 0   ;;  %s969_s19 = smov 0   ;;  %s1074_s0 = inlined_call_operand.vmem [shape: f32[2,8,256], index: 0, kind: input, shape index: {}]   ;;  %s1075_s1 = inlined_call_operand.vmem [shape: f32[32,8], index: 1, kind: input, shape index: {}]   ;;  %s1076_s2 = inlined_call_operand.vmem [shape: f32[8,32], index: 2, kind: input, shape index: {}]   ;;  %s1077_s3 = inlined_call_operand.vmem [shape: f32[2,8,256], index: 3, kind: output, shape index: {0}]   ;;  %s1078_s4 = inlined_call_operand.vmem [shape: s32[2,1,256], index: 4, kind: output, shape index: {1}]   ;;  %s1079_s5 = inlined_call_operand.vmem [shape: f32[2,1,1,128], index: 5, kind: output, shape index: {2}]  }
   0x1   :  { %s971_s20 = smov 0  }
   0x2 LB: > { %s28_s21 = sadd.s32 1, %s928_s19  ;;  %p842_p0 = scmp.ge.s32.totalorder %s932_s20, 1  ;;  %s932_s20 = sphi %s971_s20, %s16_s20   ;;  %s928_s19 = sphi %s969_s19, %s1081_s19   ;;  %s924_s18 = sphi %s967_s18, %s1080_s18  }
   0x3   : > { %p30_p1 = scmp.ge.s32.totalorder %s28_s21, 2  ;;  %p217_p2 = scmp.lt.s32.totalorder %s932_s20, 3 }
   0x5   : > { %s1083_s21 = smov (%p30_p1, %s28_s21), 0  ;;  %p218_p3 = pnand %p842_p0, %p217_p2 }
   0x6   : > { %p268_p4 = scmp.lt.s32.totalorder (!%p218_p3), %s924_s18, 1  ;;  %v304_v0 = vld [vmem:[%s1075_s1] sm:$0xff] (!%p218_p3)  ;;  %v305_v1 = vld [vmem:[%s1075_s1 + $0x8] sm:$0xff] (!%p218_p3)  ;;  %v306_v2 = vld [vmem:[%s1075_s1 + $0x10] sm:$0xff] (!%p218_p3)  ;;  %v934_v3 = vmov (!%p218_p3), 0.0   ;;  %vm327_vm0 = vcmask (!%p218_p3), 64512  }
   0x7   : > { %221 = sbr.rel (%p218_p3) target bundleno = 510 (0x1fe), region = 32  ;;  %416 = vmatprep.mubr.f32.mxu0 (!%p218_p3), %v934_v3  ;;  %v307_v4 = vld [vmem:[%s1075_s1 + $0x18] sm:$0xff] (!%p218_p3)  ;;  %v323_v5 = vmul.f32 (!%p218_p3), %v304_v0, %v304_v0  ;;  %v324_v6 = vmul.f32 (!%p218_p3), %v305_v1, %v305_v1  ;;  %v325_v7 = vmul.f32 (!%p218_p3), %v306_v2, %v306_v2  ;;  %626 = vmatprep.mubr.f32.mxu1 (!%p218_p3), %v934_v3  ;;  %vm657_vm1 = vcmask (!%p218_p3), 1040384  }
   0x8   : > { %v326_v8 = vmul.f32 (!%p218_p3), %v307_v4, %v307_v4 }
   0x9   : > { %v328_v9 = vsel (!%p218_p3), %vm327_vm0, %v323_v5, 0.0  ;;  %v334_v10 = vsel (!%p218_p3), %vm327_vm0, %v325_v7, 0.0  ;;  %v331_v11 = vsel (!%p218_p3), %vm327_vm0, %v324_v6, 0.0 }
   0xa   : > { %329 = vadd.xlane.f32.xlu0 (!%p218_p3), %v328_v9  ;;  %335 = vadd.xlane.f32.xlu1 (!%p218_p3), %v334_v10  ;;  %v337_v14 = vsel (!%p218_p3), %vm327_vm0, %v326_v8, 0.0  ;;  %v483_v8 = vlaneseq (!%p218_p3) }
   0xe   : > { %s1085_s18 = smov (!%p268_p4, %s924_s18), 1  ;;  %332 = vadd.xlane.f32.xlu0 %v331_v11  ;;  %338 = vadd.xlane.f32.xlu1 %v337_v14 }
   0xf   : > { %s871_s30 = sshll.u32 %s1085_s18, 4  ;;  %s847_s9 = sshll.u32 %s1085_s18, 1 }
  0x10   : > { %s275_s8 = scalar_lea.vmem %s1074_s0, %s871_s30  ;;  %s294_s12 = scalar_lea.vmem %s1078_s4, %s847_s9 }
  0x11   : > { %v303_v12 = vld [vmem:[%s275_s8 + $0x8] sm:$0xff]  ;;  %v302_v13 = vld [vmem:[%s275_s8] sm:$0xff]  ;;  %s301_s17 = scalar_lea.vmem %s1079_s5, %s1085_s18  ;;  %s285_s25 = scalar_lea.vmem %s1077_s3, %s871_s30 }
  0x12   : > { %352 = vmatprep.subr.mxu0 %v303_v12  ;;  %v309_v15 = vmul.f32 %v302_v13, %v302_v13  ;;  %v310_v16 = vmul.f32 %v303_v12, %v303_v12 }
  0x13   : > { %353 = vmatpush1.msra.mxu0 %v302_v13  ;;  %v1017_v13 = vshrl.u32 %v483_v8, 7 }
  0x14   : > { %848 = vmatmul.mubr.msk.f32.vlgmr.msra.gmra.mrb[0].mxu0 %vm327_vm0, %v304_v0  ;;  %v311_v17 = vrot.slane %v309_v15, 4  ;;  %v317_v18 = vrot.slane %v310_v16, 4 }
  0x15   : > { %422 = vmatprep.mubr.f32.mxu0 %v934_v3 }
  0x16   : > { %v312_v19 = vadd.f32 %v311_v17, %v309_v15  ;;  %v318_v20 = vadd.f32 %v317_v18, %v310_v16  ;;  %v1020_v18 = vadd.s32 8, %v1017_v13 }
  0x18   : > { %849 = vmatmul.mubr.msk.f32.gmra.mrb[2].mxu0 %vm327_vm0, %v305_v1  ;;  %v313_v21 = vrot.slane %v312_v19, 2  ;;  %v319_v22 = vrot.slane %v318_v20, 2 }
  0x19   : > { %428 = vmatprep.mubr.f32.mxu0 %v934_v3 }
  0x1a   : > { %v314_v23 = vadd.f32 %v313_v21, %v312_v19  ;;  %v320_v24 = vadd.f32 %v319_v22, %v318_v20  ;;  %v1023_v19 = vadd.s32 16, %v1017_v13  ;;  %v1026_v20 = vadd.s32 24, %v1017_v13 }
  0x1c   : > { %850 = vmatmul.mubr.msk.f32.gmra.mrb[4].mxu0 %vm327_vm0, %v306_v2  ;;  %v315_v25 = vrot.slane %v314_v23, 1  ;;  %v321_v26 = vrot.slane %v320_v24, 1 }
  0x1d   : > { %434 = vmatprep.mubr.f32.mxu0 %v934_v3 }
  0x1e   : > { %v316_v28 = vadd.f32 %v315_v25, %v314_v23  ;;  %v322_v29 = vadd.f32 %v321_v26, %v320_v24 }
  0x20   : > { %851 = vmatmul.mubr.msk.f32.gmra.mrb[6].mxu0 %vm327_vm0, %v307_v4 }
  0x97   : > { %v330_v27 = vpop.xlane.xlu0 %329  ;;  %v336_v37 = vpop.xlane.xlu1 %335 }
  0x98   : > { %v441_v30 = vadd.f32 %v330_v27, %v316_v28  ;;  %v442_v31 = vadd.f32 %v330_v27, %v322_v29  ;;  %v445_v47 = vadd.f32 %v336_v37, %v316_v28  ;;  %v446_v49 = vadd.f32 %v336_v37, %v322_v29 }
  0x9b   : > { %v333_v33 = vpop.xlane.xlu0 %332  ;;  %v339_v51 = vpop.xlane.xlu1 %338 }
  0x9c   : > { %v443_v39 = vadd.f32 %v333_v33, %v316_v28  ;;  %v444_v41 = vadd.f32 %v333_v33, %v322_v29  ;;  %v447_v56 = vadd.f32 %v339_v51, %v316_v28  ;;  %v448_v58 = vadd.f32 %v339_v51, %v322_v29 }
  0xe7   : > { %v418_v32 = vpop.f32.mrb[0].mxu0 }
  0xe8   : > { %v449_v34 = vmul.f32 2.0, %v418_v32  ;;  %v420_v35 = vpop.f32.mrb[1].mxu0 }
  0xe9   : > { %v450_v36 = vmul.f32 2.0, %v420_v35 }
  0xea   : > { %v457_v38 = vsub.f32 %v441_v30, %v449_v34 }
  0xeb   : > { %v1013_v40 = vsub.f32 %v442_v31, %v450_v36  ;;  %v424_v42 = vpop.f32.mrb[2].mxu0 }
  0xec   : > { %v451_v43 = vmul.f32 2.0, %v424_v42  ;;  %v426_v44 = vpop.f32.mrb[3].mxu0 }
  0xed   : > { %v452_v45 = vmul.f32 2.0, %v426_v44 }
  0xee   : > { %v459_v46 = vsub.f32 %v443_v39, %v451_v43 }
  0xef   : > { %v460_v48 = vsub.f32 %v444_v41, %v452_v45  ;;  %v430_v50 = vpop.f32.mrb[4].mxu0 }
  0xf0   : > { %v453_v52 = vmul.f32 2.0, %v430_v50  ;;  %v432_v53 = vpop.f32.mrb[5].mxu0 }
  0xf1   : > { %v454_v54 = vmul.f32 2.0, %v432_v53 }
  0xf2   : > { %v461_v55 = vsub.f32 %v445_v47, %v453_v52  ;;  %v935_v47 = vmov 1966171168  }
  0xf3   : > { %v462_v57 = vsub.f32 %v446_v49, %v454_v54  ;;  %v436_v59 = vpop.f32.mrb[6].mxu0 }
  0xf4   : > { %v465_v60 = vmin.f32 %v457_v38, %v461_v55  ;;  %v455_v61 = vmul.f32 2.0, %v436_v59  ;;  %v438_v62 = vpop.f32.mrb[7].mxu0 }
  0xf5   : > { %v474_v63 = vmin.f32 %v1013_v40, %v462_v57  ;;  %v456_v0 = vmul.f32 2.0, %v438_v62 }
  0xf6   : > { %v463_v1 = vsub.f32 %v447_v56, %v455_v61 }
  0xf7   : > { %v464_v2 = vsub.f32 %v448_v58, %v456_v0 }
  0xf8   : > { %v466_v3 = vmin.f32 %v459_v46, %v463_v1 }
  0xf9   : > { %v475_v4 = vmin.f32 %v460_v48, %v464_v2 }
  0xfa   : > { %v467_v5 = vmin.f32 %v465_v60, %v466_v3  ;;  %v936_v60 = vmov 1.0|1.0  }
  0xfb   : > { %v476_v6 = vmin.f32 %v474_v63, %v475_v4  ;;  %v308_v63 = vld [vmem:[%s1076_s2] sm:$0xff] }
  0xfc   : > { %v468_v7 = vrot.slane %v467_v5, 4 }
  0xfd   : > { %v477_v9 = vrot.slane %v476_v6, 4 }
  0xfe   : > { %v469_v10 = vmin.f32 %v467_v5, %v468_v7 }
  0xff   : > { %v478_v11 = vmin.f32 %v476_v6, %v477_v9 }
 0x100   : > { %v470_v12 = vrot.slane %v469_v10, 2 }
 0x101   : > { %v479_v14 = vrot.slane %v478_v11, 2 }
 0x102   : > { %v471_v15 = vmin.f32 %v469_v10, %v470_v12 }
 0x103   : > { %v480_v16 = vmin.f32 %v478_v11, %v479_v14 }
 0x104   : > { %v472_v17 = vrot.slane %v471_v15, 1 }
 0x105   : > { %v481_v21 = vrot.slane %v480_v16, 1 }
 0x106   : > { %v473_v22 = vmin.f32 %v471_v15, %v472_v17 }
 0x107   : > { %v482_v23 = vmin.f32 %v480_v16, %v481_v21 }
 0x108   : > { %vm488_vm2 = vcmp.eq.f32.partialorder %v457_v38, %v473_v22  ;;  %vm490_vm3 = vcmp.eq.f32.partialorder %v459_v46, %v473_v22  ;;  %vm492_vm4 = vcmp.eq.f32.partialorder %v461_v55, %v473_v22  ;;  %vm494_vm5 = vcmp.eq.f32.partialorder %v463_v1, %v473_v22 }
 0x109   : > { %v496_v24 = vsel %vm488_vm2, %v1017_v13, 32  ;;  %v498_v25 = vsel %vm490_vm3, %v1020_v18, 32  ;;  %v500_v26 = vsel %vm492_vm4, %v1023_v19, 32  ;;  %v502_v27 = vsel %vm494_vm5, %v1026_v20, 32 }
 0x10a   : > { %vm504_vm6 = vcmp.lt.s32.totalorder %v496_v24, %v500_v26  ;;  %vm506_vm7 = vcmp.lt.s32.totalorder %v498_v25, %v502_v27  ;;  %vm489_vm8 = vcmp.eq.f32.partialorder %v1013_v40, %v482_v23  ;;  %vm491_vm9 = vcmp.eq.f32.partialorder %v460_v48, %v482_v23 }
 0x10b   : > { %v505_v28 = vsel %vm504_vm6, %v496_v24, %v500_v26  ;;  %v507_v29 = vsel %vm506_vm7, %v498_v25, %v502_v27  ;;  %vm493_vm10 = vcmp.eq.f32.partialorder %v462_v57, %v482_v23  ;;  %vm495_vm11 = vcmp.eq.f32.partialorder %v464_v2, %v482_v23 }
 0x10c   : > { %vm508_vm12 = vcmp.lt.s32.totalorder %v505_v28, %v507_v29  ;;  %v497_v30 = vsel %vm489_vm8, %v1017_v13, 32  ;;  %v499_v31 = vsel %vm491_vm9, %v1020_v18, 32  ;;  %v501_v32 = vsel %vm493_vm10, %v1023_v19, 32 }
 0x10d   : > { %v509_v33 = vsel %vm508_vm12, %v505_v28, %v507_v29  ;;  %v503_v34 = vsel %vm495_vm11, %v1026_v20, 32  ;;  %vm519_vm13 = vcmp.lt.s32.totalorder %v497_v30, %v501_v32  ;;  %v655_v35 = vmax.f32 %v473_v22, 0.0 }
 0x10e   : > { %v510_v36 = vrot.slane %v509_v33, 4  ;;  %v520_v37 = vsel %vm519_vm13, %v497_v30, %v501_v32  ;;  %vm521_vm14 = vcmp.lt.s32.totalorder %v499_v31, %v503_v34  ;;  %v656_v38 = vmax.f32 %v482_v23, 0.0 }
 0x10f   : > { %v522_v39 = vsel %vm521_vm14, %v499_v31, %v503_v34  ;;  %v658_v40 = vsel %vm657_vm1, %v655_v35, 0.0  ;;  %v637_v48 = vunpack.c.l.s4 %v935_v47  ;;  %vm652_vm14 = vcmp.lt.s32.totalorder %v483_v8, 256 }
 0x110   : > { %vm511_vm15 = vcmp.lt.s32.totalorder %v509_v33, %v510_v36  ;;  %vm523_vm0 = vcmp.lt.s32.totalorder %v520_v37, %v522_v39  ;;  %v659_v41 = vsel %vm657_vm1, %v656_v38, 0.0 }
 0x111   : > { %v512_v42 = vsel %vm511_vm15, %v509_v33, %v510_v36  ;;  %v524_v43 = vsel %vm523_vm0, %v520_v37, %v522_v39  ;;  %v660_v44 = vadd.f32 %v659_v41, %v658_v40  ;;  %v638_v53 = vunpack.c.0.s8 %v637_v48 }
 0x112   : > { %v513_v45 = vrot.slane %v512_v42, 2  ;;  %v525_v46 = vrot.slane %v524_v43, 4 }
 0x113   : > { %661 = vadd.xlane.f32.xlu0 %v660_v44  ;;  %v641_v57 = vsub.s32 %v638_v53, %v1017_v13 }
 0x114   : > { %vm526_vm2 = vcmp.lt.s32.totalorder %v524_v43, %v525_v46  ;;  %vm514_vm3 = vcmp.lt.s32.totalorder %v512_v42, %v513_v45 }
 0x115   : > { %v527_v49 = vsel %vm526_vm2, %v524_v43, %v525_v46  ;;  %v515_v50 = vsel %vm514_vm3, %v512_v42, %v513_v45 }
 0x116   : > { %v528_v51 = vrot.slane %v527_v49, 2  ;;  %v516_v52 = vrot.slane %v515_v50, 1 }
 0x118   : > { %vm529_vm4 = vcmp.lt.s32.totalorder %v527_v49, %v528_v51  ;;  %vm517_vm5 = vcmp.lt.s32.totalorder %v515_v50, %v516_v52 }
 0x119   : > { %v530_v54 = vsel %vm529_vm4, %v527_v49, %v528_v51  ;;  %v518_v56 = vsel %vm517_vm5, %v515_v50, %v516_v52  ;;  %vm558_vm4 = vcmask 261120  }
 0x11a   : > { %v531_v55 = vrot.slane %v530_v54, 1  ;;  %vm534_vm6 = vcmp.eq.s32.totalorder %v1017_v13, %v518_v56  ;;  %vm536_vm7 = vcmp.eq.s32.totalorder %v1020_v18, %v518_v56  ;;  %vm538_vm0 = vcmp.eq.s32.totalorder %v1023_v19, %v518_v56 }
 0x11b   : > { %vm875_vm13 = vmpackc.low %vm536_vm7, %vm534_vm6  ;;  %vm540_vm2 = vcmp.eq.s32.totalorder %v1026_v20, %v518_v56 }
 0x11c   : > { %vm532_vm1 = vcmp.lt.s32.totalorder %v530_v54, %v531_v55  ;;  %vm879_vm3 = vmpackc.low %vm540_vm2, %vm538_vm0 }
 0x11d   : > { %v533_v58 = vsel %vm532_vm1, %v530_v54, %v531_v55 }
 0x11e   : > { %vm535_vm8 = vcmp.eq.s32.totalorder %v1017_v13, %v533_v58  ;;  %vm537_vm9 = vcmp.eq.s32.totalorder %v1020_v18, %v533_v58  ;;  %v635_v59 = vcombine.low %v518_v56, %v533_v58  ;;  %vm539_vm10 = vcmp.eq.s32.totalorder %v1023_v19, %v533_v58 }
 0x11f   : > { %vm873_vm11 = vmpackc.low %vm537_vm9, %vm535_vm8  ;;  %vm541_vm12 = vcmp.eq.s32.totalorder %v1026_v20, %v533_v58 }
 0x120   : > { %874 = vmatprep.subr.msk.bf16.mxu1 %vm873_vm11, %v936_v60  ;;  %v642_v61 = vrot.slane %v635_v59, %v641_v57  ;;  %vm877_vm15 = vmpackc.low %vm541_vm12, %vm539_vm10 }
 0x121   : > { %876 = vmatpush1.bf16.msk.msra.mxu1 %vm875_vm13, %v936_v60 }
 0x122   : > { %v649_v62 = vrot.slane %v642_v61, %v641_v57  ;;  %878 = vmatprep.subr.msk.bf16.mxu1 %vm877_vm15, %v936_v60 }
 0x124   : > { %654 = vst.msk [vmem:[%s294_s12] sm:$0x3] %vm652_vm14, %v649_v62 }
 0x125   : > { %880 = vmatpush1.bf16.msk.msra.mxu1 %vm879_vm3, %v936_v60 }
 0x128   : > { %868 = vmatmul.mubr.msk.f32.vlgmr.msra.gmra.mrb[0].mxu1 %vm558_vm4, %v308_v63 }
 0x1a0   : > { %v662_v0 = vpop.xlane.xlu0 %661 }
 0x1a1   : > { %v663_v1 = vrot.slane %v662_v0, 4 }
 0x1a3   : > { %v664_v2 = vadd.f32 %v663_v1, %v662_v0 }
 0x1a5   : > { %v665_v3 = vrot.slane %v664_v2, 2 }
 0x1a7   : > { %v666_v4 = vadd.f32 %v665_v3, %v664_v2 }
 0x1a9   : > { %v667_v5 = vrot.slane %v666_v4, 1 }
 0x1ab   : > { %v668_v6 = vadd.f32 %v667_v5, %v666_v4 }
 0x1ad   : > { %881 = vpush %v668_v6 }
 0x1de   : > { %s882_s22 = spop %881 }
 0x1df   : > { %v670_v7 = vstv %s882_s22 }
 0x1e0   : > { %671 = vst [vmem:[%s301_s17] sm:$0x1] %v670_v7 }
 0x1fb   : > { %v628_v8 = vpop.f32.mrb[0].mxu1 }
 0x1fc   : > { %633 = vst [vmem:[%s285_s25] sm:$0xff] %v628_v8  ;;  %v630_v9 = vpop.f32.mrb[1].mxu1 }
 0x1fd   : > { %634 = vst [vmem:[%s285_s25 + $0x8] sm:$0xff] %v630_v9 }
 0x1fe PF: > { %s16_s20 = sadd.s32 1, %s932_s20   ;;  %s1080_s18 = smov %s928_s19 }
 0x1ff   : > { %p13_p5 = scmp.ge.s32.totalorder %s16_s20, 4   ;;  %s1081_s19 = smov %s1083_s21 }
 0x201   :  { %15 = sbr.rel (!%p13_p5) target bundleno = 2 (0x2), region = 86 }

</bundles_post_ra>
